<compile_context>
chip_gen: v5e
topology: v5e:2x2
jax: 0.10.0
libtpu: 0.0.40
codegen_flags: <defaults>
</compile_context>

<pallas_src>
import functools

import jax
import jax.numpy as jnp
import numpy as np
from jax.experimental import pallas as pl
from jax.experimental.pallas import tpu as pltpu


def _round_up(x: int, m: int) -> int:
    return ((x + m - 1) // m) * m


def _cdiv(a: int, b: int) -> int:
    return (a + b - 1) // b


def _choose_tiles(n: int, t: int):
    """Pick (tile_n, n_pad, tile_t, t_pad) for the [N, T] cost matrix."""
    # Target (lane) axis: lane-dense 512-wide tiles for large T, full width
    # (128-padded) otherwise.
    t128 = _round_up(max(t, 1), 128)
    if t128 > 512:
        tile_t = 512
        t_pad = _round_up(t128, 512)
    else:
        tile_t = t128
        t_pad = t128
    t_steps = t_pad // tile_t

    # Prediction (sublane) axis: cap at 256 rows (vreg pressure from the
    # per-row column temporaries), keep padding waste small, and make sure the
    # total grid has >= 4 steps so the v7x megacore can shard it.
    n8 = _round_up(max(n, 8), 8)
    tile_n = 8
    for cand in (256, 128, 64, 32, 16, 8):
        if cand > n8:
            continue
        if _round_up(n8, cand) <= n8 + max(n8 // 10, 8):   # <= ~10% waste
            tile_n = cand
            break
    while tile_n > 8 and (_cdiv(n8, tile_n) * t_steps) < 4:
        tile_n //= 2
    n_pad = _round_up(n8, tile_n)
    return tile_n, n_pad, tile_t, t_pad


def _cost_kernel(pred_ref, tlab_ref, tpts_ref, cost_ref, *,
                 num_classes: int, w_class: float, point_scale: float):
    # pred_ref: [TILE_N, C+2]  (logits | x | y), coords already scaled by
    #           cost_point when cost_point >= 0.
    # tlab_ref: [1, TILE_T] int32 (padded entries = -1, never match a class)
    # tpts_ref: [2, TILE_T] f32   (transposed, prescaled target points)
    # cost_ref: [TILE_N, TILE_T] f32
    pred = pred_ref[...].astype(jnp.float32)
    logits = pred[:, :num_classes]                                # [TN, C]
    px = pred[:, num_classes:num_classes + 1]                     # [TN, 1]
    py = pred[:, num_classes + 1:num_classes + 2]                 # [TN, 1]

    # Per-row softmax probabilities: only C exps per row (no per-output exp).
    m = jnp.max(logits, axis=-1, keepdims=True)                   # [TN, 1]
    e = jnp.exp(logits - m)
    probs = e / jnp.sum(e, axis=-1, keepdims=True)                # [TN, C]
    neg_w_probs = (-w_class) * probs                              # fold weight

    # Gather -w_class * prob[target_label] with an unrolled compare/select
    # over the (small, static) class axis -- pure VPU, no MXU / per-elem exp.
    lab = tlab_ref[...]                                           # [1, TT]
    cost = jnp.zeros(cost_ref.shape, jnp.float32)                 # [TN, TT]
    for c in range(num_classes):
        cost = jnp.where(lab == c, neg_w_probs[:, c:c + 1], cost)

    # Euclidean (p=2) distance; weight already folded into the coordinates
    # when point_scale == 1.0, otherwise applied here (cost_point < 0 case).
    tx = tpts_ref[0:1, :]                                         # [1, TT]
    ty = tpts_ref[1:2, :]
    dx = px - tx
    dy = py - ty
    dist = jnp.sqrt(dx * dx + dy * dy)
    if point_scale == 1.0:
        cost = cost + dist
    else:
        cost = cost + point_scale * dist
    cost_ref[...] = cost


def pallas_cost_matrix(pred_logits, pred_points, tgt_labels, tgt_points,
                       cost_class: float = 1.0, cost_point: float = 1.0):
    """Returns the [B*Q, T] matching cost matrix (float32)."""
    b, q, c = pred_logits.shape
    n = b * q
    t = int(tgt_labels.shape[0])

    tile_n, n_pad, tile_t, t_pad = _choose_tiles(n, t)

    # Fold cost_point into the coordinates when it is non-negative
    # (sqrt(w^2 * d^2) == w * sqrt(d^2) for w >= 0).
    if cost_point >= 0:
        coord_scale, point_scale = float(cost_point), 1.0
    else:
        coord_scale, point_scale = 1.0, float(cost_point)

    logits = pred_logits.reshape(n, c).astype(jnp.float32)
    points = pred_points.reshape(n, 2).astype(jnp.float32) * coord_scale
    pred = jnp.concatenate([logits, points], axis=-1)             # [N, C+2]
    if n_pad != n:
        pred = jnp.pad(pred, ((0, n_pad - n), (0, 0)))

    lab = jnp.full((1, t_pad), -1, dtype=jnp.int32)
    lab = lab.at[0, :t].set(tgt_labels.astype(jnp.int32))
    tpts = jnp.zeros((2, t_pad), dtype=jnp.float32)
    tpts = tpts.at[:, :t].set(tgt_points.astype(jnp.float32).T * coord_scale)

    kernel = functools.partial(
        _cost_kernel, num_classes=int(c),
        w_class=float(cost_class), point_scale=point_scale)

    grid = (n_pad // tile_n, t_pad // tile_t)

    # VMEM sizing: double-buffered blocks + a few output-sized intermediates,
    # with generous headroom but capped below every generation's physical VMEM.
    out_blk = tile_n * tile_t * 4
    in_blk = tile_n * (c + 2) * 4 + 3 * tile_t * 4
    needed = 2 * (out_blk + in_blk) + 4 * out_blk
    try:
        vmem_cap = int(getattr(pltpu.get_tpu_info(), "vmem_capacity_bytes",
                               64 * 1024 * 1024))
    except Exception:
        vmem_cap = 64 * 1024 * 1024
    vmem_limit = int(min(max(4 * needed, 16 << 20), 32 << 20, vmem_cap // 2))

    flops = 10 * n_pad * t_pad                      # sub/sq/add + selects + add
    transcendentals = n_pad * t_pad + n_pad * c     # sqrt per elem + row exps
    bytes_accessed = 4 * (n_pad * t_pad + n_pad * (c + 2)
                          + grid[0] * 3 * t_pad)

    cost = pl.pallas_call(
        kernel,
        out_shape=jax.ShapeDtypeStruct((n_pad, t_pad), jnp.float32),
        grid=grid,
        in_specs=[
            pl.BlockSpec((tile_n, c + 2), lambda i, j: (i, 0)),
            pl.BlockSpec((1, tile_t), lambda i, j: (0, j)),
            pl.BlockSpec((2, tile_t), lambda i, j: (0, j)),
        ],
        out_specs=pl.BlockSpec((tile_n, tile_t), lambda i, j: (i, j)),
        compiler_params=pltpu.CompilerParams(
            dimension_semantics=("parallel", "parallel"),
            vmem_limit_bytes=vmem_limit),
        cost_estimate=pl.CostEstimate(
            flops=flops, transcendentals=transcendentals,
            bytes_accessed=bytes_accessed),
    )(pred, lab, tpts)

    # Drop padded prediction rows and padded target columns.
    return cost[:n, :t]


def hungarian_matcher_crowd(outputs, targets, cost_class=1.0, cost_point=1.0):
    """Same semantics as HungarianMatcher_Crowd.forward (indices per batch)."""
    pred_logits = outputs["pred_logits"]
    pred_points = outputs["pred_points"]
    bs, num_queries = pred_logits.shape[:2]
    tgt_labels = jnp.concatenate([v["labels"] for v in targets])
    tgt_points = jnp.concatenate([v["point"] for v in targets])

    cost = pallas_cost_matrix(pred_logits, pred_points, tgt_labels, tgt_points,
                              cost_class=cost_class, cost_point=cost_point)
    cost_np = np.asarray(jax.device_get(cost)).reshape(bs, num_queries, -1)
    sizes = [int(v["point"].shape[0]) for v in targets]

    try:
        from scipy.optimize import linear_sum_assignment  # host-side solver
    except Exception:
        linear_sum_assignment = None  # TODO(synk): Hungarian LSA solve has no Pallas equivalent; skipped when scipy is unavailable.

    indices = []
    col = 0
    for i, sz in enumerate(sizes):
        c_i = cost_np[i, :, col:col + sz]
        col += sz
        if linear_sum_assignment is None:
            indices.append((None, None))
        else:
            r, cidx = linear_sum_assignment(c_i)
            indices.append((np.asarray(r, dtype=np.int64),
                            np.asarray(cidx, dtype=np.int64)))
    return indices


if __name__ == "__main__":
    key = jax.random.PRNGKey(0)
    B, Q, C = 2, 128, 2                      # small crowd-matcher shapes
    W_CLASS, W_POINT = 1.0, 0.05
    k1, k2, k3 = jax.random.split(key, 3)

    pred_logits = jax.random.normal(k1, (B, Q, C), dtype=jnp.float32)
    pred_points = jax.random.uniform(k2, (B, Q, 2), dtype=jnp.float32) * 128.0

    sizes = [5, 9]
    tkeys = jax.random.split(k3, len(sizes))
    targets = []
    for i, sz in enumerate(sizes):
        targets.append({
            "labels": jnp.ones((sz,), dtype=jnp.int32),   # foreground class
            "point": jax.random.uniform(tkeys[i], (sz, 2),
                                        dtype=jnp.float32) * 128.0,
        })

    tgt_labels = jnp.concatenate([t["labels"] for t in targets])
    tgt_points = jnp.concatenate([t["point"] for t in targets])

    # Run the Pallas kernel.
    cost = pallas_cost_matrix(pred_logits, pred_points, tgt_labels, tgt_points,
                              cost_class=W_CLASS, cost_point=W_POINT)
    cost = jax.block_until_ready(cost)

    # Pure-JAX reference check of the cost matrix.
    out_prob = jax.nn.softmax(pred_logits.reshape(-1, C), axis=-1)
    out_points = pred_points.reshape(-1, 2)
    ref_class = -out_prob[:, tgt_labels]
    diff = out_points[:, None, :] - tgt_points[None, :, :]
    ref_point = jnp.sqrt(jnp.sum(diff * diff, axis=-1))
    ref = W_POINT * ref_point + W_CLASS * ref_class
    max_err = float(jnp.max(jnp.abs(cost - ref)))
    assert max_err < 5e-3, f"cost matrix mismatch, max abs err = {max_err}"

    # Full matcher (per-batch split + host-side Hungarian assignment).
    _ = hungarian_matcher_crowd(
        {"pred_logits": pred_logits, "pred_points": pred_points}, targets,
        cost_class=W_CLASS, cost_point=W_POINT)

    print("KERNEL_OK")
</pallas_src>

<mosaic_0001>
module attributes {stable_mosaic.version = 11 : i64} {
  func.func @_cost_kernel(%arg0: i32, %arg1: i32, %arg2: memref<64x4xf32, #tpu.memory_space<vmem>>, %arg3: memref<1x128xi32, #tpu.memory_space<vmem>>, %arg4: memref<2x128xf32, #tpu.memory_space<vmem>>, %arg5: memref<64x128xf32, #tpu.memory_space<vmem>>) attributes {dimension_semantics = [#tpu.dimension_semantics<parallel>, #tpu.dimension_semantics<parallel>], iteration_bounds = array<i64: 4, 1>, scalar_prefetch = 0 : i64, scratch_operands = 0 : i64, tpu.core_type = #tpu.core_type<tc>, window_params = [{transform_indices = @transform_0, window_bounds = array<i64: 64, 4>}, {transform_indices = @transform_1, window_bounds = array<i64: 1, 128>}, {transform_indices = @transform_2, window_bounds = array<i64: 2, 128>}, {transform_indices = @transform_3, window_bounds = array<i64: 64, 128>}]} {
    %c0 = arith.constant 0 : index
    %c0_0 = arith.constant 0 : index
    %0 = vector.load %arg2[%c0, %c0_0] : memref<64x4xf32, #tpu.memory_space<vmem>>, vector<64x4xf32>
    %1 = vector.extract_strided_slice %0 {offsets = [0, 0], sizes = [64, 2], strides = [1, 1]} : vector<64x4xf32> to vector<64x2xf32>
    %2 = vector.extract_strided_slice %0 {offsets = [0, 2], sizes = [64, 1], strides = [1, 1]} : vector<64x4xf32> to vector<64x1xf32>
    %3 = vector.extract_strided_slice %0 {offsets = [0, 3], sizes = [64, 1], strides = [1, 1]} : vector<64x4xf32> to vector<64x1xf32>
    %cst = arith.constant dense<0xFF800000> : vector<64xf32>
    %4 = vector.multi_reduction <maximumf>, %1, %cst [1] : vector<64x2xf32> to vector<64xf32>
    %5 = vector.shape_cast %4 : vector<64xf32> to vector<64x1xf32>
    %6 = vector.broadcast %5 : vector<64x1xf32> to vector<64x2xf32>
    %7 = arith.subf %1, %6 : vector<64x2xf32>
    %8 = math.exp %7 : vector<64x2xf32>
    %cst_1 = arith.constant dense<0.000000e+00> : vector<64xf32>
    %9 = vector.multi_reduction <add>, %8, %cst_1 [1] : vector<64x2xf32> to vector<64xf32>
    %10 = vector.shape_cast %9 : vector<64xf32> to vector<64x1xf32>
    %11 = vector.broadcast %10 : vector<64x1xf32> to vector<64x2xf32>
    %12 = arith.divf %8, %11 : vector<64x2xf32>
    %cst_2 = arith.constant -1.000000e+00 : f32
    %13 = vector.broadcast %cst_2 : f32 to vector<64x2xf32>
    %14 = arith.mulf %13, %12 : vector<64x2xf32>
    %c0_3 = arith.constant 0 : index
    %c0_4 = arith.constant 0 : index
    %15 = vector.load %arg3[%c0_3, %c0_4] : memref<1x128xi32, #tpu.memory_space<vmem>>, vector<1x128xi32>
    %cst_5 = arith.constant 0.000000e+00 : f32
    %16 = vector.broadcast %cst_5 : f32 to vector<64x128xf32>
    %c0_i32 = arith.constant 0 : i32
    %17 = vector.broadcast %c0_i32 : i32 to vector<1x128xi32>
    %18 = arith.cmpi eq, %15, %17 : vector<1x128xi32>
    %19 = vector.extract_strided_slice %14 {offsets = [0, 0], sizes = [64, 1], strides = [1, 1]} : vector<64x2xf32> to vector<64x1xf32>
    %20 = vector.shape_cast %18 : vector<1x128xi1> to vector<1x128xi1>
    %21 = vector.broadcast %20 : vector<1x128xi1> to vector<64x128xi1>
    %22 = vector.shape_cast %19 : vector<64x1xf32> to vector<64x1xf32>
    %23 = vector.broadcast %22 : vector<64x1xf32> to vector<64x128xf32>
    %24 = arith.select %21, %23, %16 : vector<64x128xi1>, vector<64x128xf32>
    %c1_i32 = arith.constant 1 : i32
    %25 = vector.broadcast %c1_i32 : i32 to vector<1x128xi32>
    %26 = arith.cmpi eq, %15, %25 : vector<1x128xi32>
    %27 = vector.extract_strided_slice %14 {offsets = [0, 1], sizes = [64, 1], strides = [1, 1]} : vector<64x2xf32> to vector<64x1xf32>
    %28 = vector.shape_cast %26 : vector<1x128xi1> to vector<1x128xi1>
    %29 = vector.broadcast %28 : vector<1x128xi1> to vector<64x128xi1>
    %30 = vector.shape_cast %27 : vector<64x1xf32> to vector<64x1xf32>
    %31 = vector.broadcast %30 : vector<64x1xf32> to vector<64x128xf32>
    %32 = arith.select %29, %31, %24 : vector<64x128xi1>, vector<64x128xf32>
    %c0_6 = arith.constant 0 : index
    %c0_7 = arith.constant 0 : index
    %33 = vector.load %arg4[%c0_6, %c0_7] : memref<2x128xf32, #tpu.memory_space<vmem>>, vector<1x128xf32>
    %c1 = arith.constant 1 : index
    %c0_8 = arith.constant 0 : index
    %34 = vector.load %arg4[%c1, %c0_8] : memref<2x128xf32, #tpu.memory_space<vmem>>, vector<1x128xf32>
    %35 = vector.broadcast %2 : vector<64x1xf32> to vector<64x128xf32>
    %36 = vector.broadcast %33 : vector<1x128xf32> to vector<64x128xf32>
    %37 = arith.subf %35, %36 : vector<64x128xf32>
    %38 = vector.broadcast %3 : vector<64x1xf32> to vector<64x128xf32>
    %39 = vector.broadcast %34 : vector<1x128xf32> to vector<64x128xf32>
    %40 = arith.subf %38, %39 : vector<64x128xf32>
    %41 = arith.mulf %37, %37 : vector<64x128xf32>
    %42 = arith.mulf %40, %40 : vector<64x128xf32>
    %43 = arith.addf %41, %42 : vector<64x128xf32>
    %44 = math.sqrt %43 : vector<64x128xf32>
    %45 = arith.addf %32, %44 : vector<64x128xf32>
    %c0_9 = arith.constant 0 : index
    %c0_10 = arith.constant 0 : index
    %46 = vector.load %arg5[%c0_9, %c0_10] : memref<64x128xf32, #tpu.memory_space<vmem>>, vector<64x128xf32>
    tpu.vector_store %arg5[%c0_9, %c0_10], %45 {strides = array<i32>} : memref<64x128xf32, #tpu.memory_space<vmem>>, vector<64x128xf32>,
    return
  }
  func.func @transform_0(%arg0: i32, %arg1: i32) -> (i32, i32) {
    %c0_i32 = arith.constant 0 : i32
    %c0_i32_0 = arith.constant 0 : i32
    return %arg0, %c0_i32 : i32, i32
  }
  func.func @transform_1(%arg0: i32, %arg1: i32) -> (i32, i32) {
    %c0_i32 = arith.constant 0 : i32
    %c0_i32_0 = arith.constant 0 : i32
    return %c0_i32, %arg1 : i32, i32
  }
  func.func @transform_2(%arg0: i32, %arg1: i32) -> (i32, i32) {
    %c0_i32 = arith.constant 0 : i32
    %c0_i32_0 = arith.constant 0 : i32
    return %c0_i32, %arg1 : i32, i32
  }
  func.func @transform_3(%arg0: i32, %arg1: i32) -> (i32, i32) {
    %c0_i32 = arith.constant 0 : i32
    return %arg0, %arg1 : i32, i32
  }
}

</mosaic_0001>

<bundles_post_ra>
// kernel: tpu_custom_call.1
= control target key start
LH: loop header
LB: loop body
LE: loop exit
PB: predicated region body
PF: predicated region fallthrough
CT: control target
= control target key end

     0   :  { %8 = vsyncpa [#allocation3], 0  ;;  %s1574_s0 = inlined_call_operand.vmem [shape: f32[256,4], index: 0, kind: input, shape index: {}]   ;;  %s1575_s1 = inlined_call_operand.vmem [shape: s32[1,128], index: 1, kind: input, shape index: {}]   ;;  %s1576_s2 = inlined_call_operand.vmem [shape: f32[2,128], index: 2, kind: input, shape index: {}]   ;;  %s1577_s3 = inlined_call_operand.hbm [shape: f32[256,128], index: 3, kind: output, shape index: {}]  }
   0x1   :  { %10 = vsyncpa [#allocation3 + $0x1], 0  ;;  %s1115_s12 = smov 0   ;;  %s1117_s13 = smov 0  }
   0x2   :  { %s1119_s14 = smov 0   ;;  %s1121_s15 = smov 0  }
   0x3   :  { %s1123_s16 = smov 0   ;;  %s1125_s17 = smov 0  }
   0x4 LB: > { %s867_s18 = sadd.s32 4294967295, %s1087_s17   ;;  %s868_s19 = sadd.s32 4294967294, %s1087_s17   ;;  %s1087_s17 = sphi %s1125_s17, %s16_s17   ;;  %s1083_s16 = sphi %s1123_s16, %s1600_s16   ;;  %s1079_s15 = sphi %s1121_s15, %s1599_s15   ;;  %s1075_s14 = sphi %s1119_s14, %s1598_s14   ;;  %s1071_s13 = sphi %s1117_s13, %s1597_s13   ;;  %s1067_s12 = sphi %s1115_s12, %s1596_s12  }
   0x5   : > { %s28_s20 = sadd.s32 1, %s1083_s16  ;;  %s115_s21 = sadd.s32 1, %s1075_s14 }
   0x6   : > { %p30_p0 = scmp.ge.s32.totalorder %s28_s20, 4  ;;  %p125_p1 = scmp.ne.s32.totalorder %s1075_s14, %s1071_s13 }
   0x7   : > { %p126_p2 = scmp.eq.s32.totalorder %s867_s18, 3  ;;  %p131_p3 = scmp.ne.s32.totalorder %s1071_s13, %s1067_s12 }
   0x8   : > { %s1602_s20 = smov (%p30_p0, %s28_s20), 0  ;;  %p132_p5 = scmp.eq.s32.totalorder %s868_s19, 3 }
   0x9   : > { %p1155_p4 = por %p126_p2, %p125_p1  ;;  %s110_s23 = ssub.s32 %s1083_s16, %s1602_s20 }
   0xa   : > { %p873_p6 = scmp.ge.s32.totalorder %s1087_s17, 1  ;;  %p113_p7 = scmp.eq.s32.totalorder %s110_s23, 0 }
   0xb   : > { %p1162_p8 = por %p132_p5, %p131_p3  ;;  %p172_p9 = scmp.lt.s32.totalorder %s1087_s17, 5 }
   0xc   : > { %s1168_s25 = scalar_select %p113_p7, %s1075_s14, %s115_s21  }
   0xd   : > { %p173_p10 = pnand %p873_p6, %p172_p9 }
   0xe   : > { %s875_s26 = sshll.u32 (!%p173_p10), %s1079_s15, 3  ;;  %s200_s10 = sand.u32 (!%p173_p10), 1, %s1071_s13  }
   0xf   : > { %176 = sbr.rel (%p173_p10) target bundleno = 498 (0x1f2), region = 32  ;;  %p204_p11 = scmp.lt.s32.totalorder (!%p173_p10), %s875_s26, 31 }
  0x10   : > { %s874_s11 = sshll.u32 (!%p173_p10), %s200_s10, 6  ;;  %s882_s19 = sshll.u32 (!%p173_p10), %s1079_s15, 6 }
  0x11   : > { %s1457_s18 = scalar_lea.vmem (!%p173_p10), [#allocation2], %s874_s11  ;;  %s752_s15 = scalar_lea.sflag (!%p173_p10), [#allocation3], %s200_s10 }
  0x12   : > { %s1029_s6 = scalar_lea.hbm (!%p173_p10), %s1577_s3, 256 }
  0x14   : > { %v1089_v0 = vmov 2   ;;  %s1604_s26 = smov (!%p204_p11, %s875_s26), 31  ;;  %vm225_vm0 = vcmask 15360   ;;  %v1090_v17 = vmov 3   ;;  %v1243_v60 = vld [vmem:[%s1576_s2] ss:$0 sm:$0xff] }
  0x15   : > { %946 = vset.pattern.permute.xlu2 %v1089_v0  ;;  %945 = vset.pattern.permute.xlu0 %v1089_v0  ;;  %s876_s27 = sshll.u32 %s1604_s26, 3  ;;  %v1250_v62 = vld [vmem:[%s1576_s2 + $0x1] ss:$0 sm:$0xff]  ;;  %s764_s26 = scalar_lea.hbm %s1577_s3, %s882_s19 }
  0x16   : > { %944 = vset.pattern.permute.xlu1 %v1089_v0  ;;  %s207_s30 = scalar_lea.vmem %s1574_s0, %s876_s27  ;;  %s765_s27 = sshll.u32 %s1457_s18, 4  ;;  %s766_s27 = int_to_ptr.vmem [resolvable:$true] %s765_s27 }
  0x17   : > { %v1174_v1 = vld [vmem:[%s207_s30 + $0x20] sm:$0xff]  ;;  %v219_v2 = vld [vmem:[%s207_s30 + $0x10] sm:$0xff]  ;;  %v1180_v7 = vld [vmem:[%s207_s30 + $0x28] sm:$0xff]  ;;  %s767_s28 = sshll.u32 %s764_s26, 4  ;;  %s768_s28 = int_to_ptr.hbm [resolvable:$true] %s767_s28 }
  0x18   : > { %v217_v3 = vld [vmem:[%s207_s30] sm:$0xff]  ;;  %v238_v4 = vsel %vm225_vm0, %v1174_v1, -inf  ;;  %v232_v5 = vsel %vm225_vm0, %v219_v2, -inf  ;;  %v220_v8 = vld [vmem:[%s207_s30 + $0x18] sm:$0xff]  ;;  %v218_v9 = vld [vmem:[%s207_s30 + $0x8] sm:$0xff]  ;;  %v241_v10 = vsel %vm225_vm0, %v1180_v7, -inf }
  0x19   : > { %v226_v6 = vsel %vm225_vm0, %v217_v3, -inf  ;;  %239 = vmax.xlane.f32.xlu2 %v238_v4  ;;  %233 = vmax.xlane.f32.xlu1 %v232_v5  ;;  %v235_v11 = vsel %vm225_vm0, %v220_v8, -inf  ;;  %v229_v12 = vsel %vm225_vm0, %v218_v9, -inf  ;;  %v1186_v13 = vld [vmem:[%s207_s30 + $0x38] sm:$0xff]  ;;  %v1188_v14 = vld [vmem:[%s207_s30 + $0x30] sm:$0xff]  ;;  %s1023_s29 = sshra.s32 %s768_s28, 4  ;;  %s1024_s29 = int_to_ptr.hbm [resolvable:$true] %s1023_s29 }
  0x1a   : > { %227 = vmax.xlane.f32.xlu0 %v226_v6  ;;  %v247_v15 = vsel %vm225_vm0, %v1186_v13, -inf  ;;  %v244_v16 = vsel %vm225_vm0, %v1188_v14, -inf  ;;  %s1025_s30 = scalar_lea.hbm %s1024_s29, 64  ;;  %p1030_p1 = scmp.lt.s32.totalorder %s1024_s29, %s1577_s3 }
  0x1b   : > { %p1026_p12 = scmp.ne.s32.totalorder %s1024_s29, %s1025_s30  ;;  %p1031_p2 = scmp.lt.s32.totalorder %s1029_s6, %s1025_s30 }
  0x1d   : > { %p1027_p13 = pnand %p1026_p12, %p1155_p4  ;;  %p1032_p3 = por %p1031_p2, %p1030_p1 }
  0x1f   : > { %p1028_p0 = pneg %p1027_p13 }
  0x21   : > { %242 = vmax.xlane.f32.xlu2 %v241_v10  ;;  %236 = vmax.xlane.f32.xlu1 %v235_v11  ;;  %p1033_p5 = pnand %p1032_p3, %p1028_p0 }
  0x22   : > { %230 = vmax.xlane.f32.xlu0 %v229_v12 }
  0x29   : > { %248 = vmax.xlane.f32.xlu1 %v247_v15 }
  0x2a   : > { %245 = vmax.xlane.f32.xlu0 %v244_v16 }
  0x39   : > { %537 = vperm.xlu2 %946, %v219_v2  }
  0x3e   : > { %532 = vperm.xlu0 %945, %v218_v9  }
  0x41   : > { %547 = vperm.xlu2 %946, %v1174_v1  }
  0x42   : > { %527 = vperm.xlu1 %944, %v217_v3  }
  0x46   : > { %557 = vperm.xlu0 %945, %v1188_v14  }
  0x49   : > { %562 = vperm.xlu2 %946, %v1186_v13  }
  0x4a   : > { %542 = vperm.xlu1 %944, %v220_v8  }
  0x4e   : > { %948 = vset.pattern.permute.xlu0 %v1090_v17 }
  0x4f   : > { %579 = vperm.xlu0 %948, %v218_v9  }
  0x51   : > { %949 = vset.pattern.permute.xlu2 %v1090_v17 }
  0x52   : > { %552 = vperm.xlu1 %944, %v1180_v7   ;;  %583 = vperm.xlu2 %949, %v219_v2  }
  0x5a   : > { %947 = vset.pattern.permute.xlu1 %v1090_v17  ;;  %591 = vperm.xlu2 %949, %v1174_v1  }
  0x5b   : > { %575 = vperm.xlu1 %947, %v217_v3  }
  0x63   : > { %587 = vperm.xlu1 %947, %v220_v8  }
  0x8c   : > { %v240_v18 = vpop.xlane.xlu2 %239  ;;  %v234_v19 = vpop.xlane.xlu1 %233 }
  0x8d   : > { %v252_v20 = vsub.f32 %v219_v2, %v234_v19  ;;  %v228_v21 = vpop.xlane.xlu0 %227  ;;  %v254_v31 = vsub.f32 %v1174_v1, %v240_v18 }
  0x8e   : > { %v250_v22 = vsub.f32 %v217_v3, %v228_v21 }
  0x8f   : > { %v262_v23 = vmul.f32 1.442695, %v252_v20  ;;  %v266_v39 = vmul.f32 1.442695, %v254_v31 }
  0x90   : > { %v258_v24 = vmul.f32 1.442695, %v250_v22 }
  0x91   : > { %961 = vpow2.f32 %v262_v23 }
  0x92   : > { %963 = vpow2.f32 %v258_v24 }
  0x94   : > { %v243_v25 = vpop.xlane.xlu2 %242  ;;  %v237_v26 = vpop.xlane.xlu1 %236 }
  0x95   : > { %v255_v27 = vsub.f32 %v1180_v7, %v243_v25  ;;  %v253_v28 = vsub.f32 %v220_v8, %v237_v26  ;;  %v231_v29 = vpop.xlane.xlu0 %230 }
  0x96   : > { %v251_v30 = vsub.f32 %v218_v9, %v231_v29 }
  0x97   : > { %v268_v32 = vmul.f32 1.442695, %v255_v27  ;;  %v264_v33 = vmul.f32 1.442695, %v253_v28  ;;  %v1204_v34 = vpop.eup %961  ;;  %v1091_v27 = vmov 0  }
  0x98   : > { %v260_v35 = vmul.f32 1.442695, %v251_v30  ;;  %v1206_v36 = vpop.eup %963  ;;  %v280_v37 = vsel %vm225_vm0, %v1204_v34, 0.0  ;;  %950 = vset.pattern.permute.xlu1 %v1091_v27  ;;  %952 = vset.pattern.permute.xlu0 %v1091_v27 }
  0x99   : > { %965 = vpow2.f32 %v268_v32  ;;  %281 = vadd.xlane.f32.xlu1 %v280_v37  ;;  %v274_v38 = vsel %vm225_vm0, %v1206_v36, 0.0  ;;  %951 = vset.pattern.permute.xlu2 %v1091_v27 }
  0x9a   : > { %967 = vpow2.f32 %v264_v33  ;;  %275 = vadd.xlane.f32.xlu2 %v274_v38 }
  0x9b   : > { %969 = vpow2.f32 %v260_v35 }
  0x9c   : > { %v538_v40 = vpop.permute.xlu2 %537  ;;  %v249_v41 = vpop.xlane.xlu1 %248  ;;  %971 = vpow2.f32 %v266_v39 }
  0x9d   : > { %v246_v42 = vpop.xlane.xlu0 %245  ;;  %v257_v45 = vsub.f32 %v1186_v13, %v249_v41  ;;  %v568_v63 = vsub.f32 %v538_v40, %v1243_v60 }
  0x9e   : > { %v256_v43 = vsub.f32 %v1188_v14, %v246_v42 }
  0x9f   : > { %v1213_v44 = vpop.eup %965  ;;  %v272_v52 = vmul.f32 1.442695, %v257_v45  ;;  %v617_v3 = vmul.f32 %v568_v63, %v568_v63 }
  0xa0   : > { %v1216_v46 = vpop.eup %967  ;;  %v270_v47 = vmul.f32 1.442695, %v256_v43  ;;  %v289_v48 = vsel %vm225_vm0, %v1213_v44, 0.0 }
  0xa1   : > { %v1220_v49 = vpop.eup %969  ;;  %v283_v50 = vsel %vm225_vm0, %v1216_v46, 0.0  ;;  %290 = vadd.xlane.f32.xlu1 %v289_v48 }
  0xa2   : > { %973 = vpow2.f32 %v270_v47  ;;  %v277_v51 = vsel %vm225_vm0, %v1220_v49, 0.0  ;;  %284 = vadd.xlane.f32.xlu2 %v283_v50  ;;  %v1228_v54 = vpop.eup %971 }
  0xa3   : > { %278 = vadd.xlane.f32.xlu0 %v277_v51  ;;  %975 = vpow2.f32 %v272_v52  ;;  %v286_v56 = vsel %vm225_vm0, %v1228_v54, 0.0 }
  0xa4   : > { %v1226_v53 = vpop.permute.xlu2 %547 }
  0xa8   : > { %v1230_v55 = vpop.eup %973 }
  0xa9   : > { %v292_v57 = vsel %vm225_vm0, %v1230_v55, 0.0  ;;  %v1238_v59 = vpop.eup %975 }
  0xaa   : > { %293 = vadd.xlane.f32.xlu2 %v292_v57  ;;  %v295_v61 = vsel %vm225_vm0, %v1238_v59, 0.0 }
  0xab   : > { %287 = vadd.xlane.f32.xlu0 %v286_v56 }
  0xac   : > { %v1236_v58 = vpop.permute.xlu2 %562 }
  0xb0   : > { %v1267_v25 = vpop.permute.xlu0 %532 }
  0xb3   : > { %296 = vadd.xlane.f32.xlu0 %v295_v61 }
  0xb4   : > { %v584_v0 = vpop.permute.xlu2 %583  ;;  %v528_v1 = vpop.permute.xlu1 %527 }
  0xb5   : > { %v609_v2 = vsub.f32 %v584_v0, %v1250_v62  ;;  %v566_v10 = vsub.f32 %v528_v1, %v1243_v60 }
  0xb7   : > { %v625_v4 = vmul.f32 %v609_v2, %v609_v2  ;;  %v615_v12 = vmul.f32 %v566_v10, %v566_v10 }
  0xb8   : > { %v1269_v26 = vpop.permute.xlu0 %557 }
  0xb9   : > { %v1254_v5 = vadd.f32 %v625_v4, %v617_v3 }
  0xbc   : > { %v543_v6 = vpop.permute.xlu1 %542  ;;  %v1273_v28 = vpop.permute.xlu2 %591 }
  0xbd   : > { %v569_v18 = vsub.f32 %v543_v6, %v1243_v60 }
  0xbf   : > { %v618_v21 = vmul.f32 %v569_v18, %v569_v18 }
  0xc1   : > { %v1276_v30 = vpop.permute.xlu0 %579 }
  0xc4   : > { %v553_v8 = vpop.permute.xlu1 %552 }
  0xc5   : > { %v1257_v9 = vsub.f32 %v553_v8, %v1243_v60 }
  0xcd   : > { %v576_v11 = vpop.permute.xlu1 %575 }
  0xce   : > { %v607_v15 = vsub.f32 %v576_v11, %v1250_v62 }
  0xd0   : > { %v623_v16 = vmul.f32 %v607_v15, %v607_v15 }
  0xd2   : > { %v1262_v19 = vadd.f32 %v623_v16, %v615_v12 }
  0xd5   : > { %v588_v20 = vpop.permute.xlu1 %587 }
  0xd6   : > { %v610_v22 = vsub.f32 %v588_v20, %v1250_v62 }
  0xd8   : > { %v626_v23 = vmul.f32 %v610_v22, %v610_v22 }
  0xda   : > { %v1265_v24 = vadd.f32 %v626_v23, %v618_v21 }
 0x10c   : > { %v282_v29 = vpop.xlane.xlu1 %281 }
 0x10d   : > { %977 = vrcp.f32 %v282_v29  ;;  %v276_v31 = vpop.xlane.xlu2 %275  ;;  %vm333_vm1 = vweird.f32 %v282_v29  ;;  %v339_v45 = vand.u32 2147483648, %v282_v29  ;;  %v337_v50 = vand.u32 2147483647, %v282_v29 }
 0x10e   : > { %979 = vrcp.f32 %v276_v31  ;;  %v309_v48 = vand.u32 2147483648, %v276_v31  ;;  %vm303_vm5 = vweird.f32 %v276_v31  ;;  %v307_v0 = vand.u32 2147483647, %v276_v31 }
 0x10f   : > { %v340_v63 = vor.u32 1.1754944e-38, %v339_v45  ;;  %vm338_vm7 = vcmp.eq.f32.partialorder %v337_v50, 8.507059e+37 }
 0x110   : > { %v310_v4 = vor.u32 1.1754944e-38, %v309_v48  ;;  %vm308_vm9 = vcmp.eq.f32.partialorder %v307_v0, 8.507059e+37 }
 0x113   : > { %v978_v32 = vpop.eup %977 }
 0x114   : > { %v980_v33 = vpop.eup %979  ;;  %v329_v35 = vmul.f32 %v978_v32, %v282_v29  ;;  %v1278_v37 = vpop.xlane.xlu1 %290  ;;  %vm334_vm2 = vweird.f32 %v978_v32 }
 0x115   : > { %v299_v38 = vmul.f32 %v980_v33, %v276_v31  ;;  %981 = vrcp.f32 %v1278_v37  ;;  %v1281_v39 = vpop.xlane.xlu2 %284  ;;  %vm304_vm3 = vweird.f32 %v980_v33  ;;  %vm1289_vm4 = vmor %vm333_vm1, %vm334_vm2  ;;  %v384_v21 = vand.u32 2147483648, %v1278_v37 }
 0x116   : > { %v1283_v40 = vpop.xlane.xlu0 %278  ;;  %v330_v41 = vsub.f32 1.0, %v329_v35  ;;  %983 = vrcp.f32 %v1281_v39  ;;  %vm1297_vm6 = vmor %vm303_vm5, %vm304_vm3  ;;  %v354_v20 = vand.u32 2147483648, %v1281_v39  ;;  %vm348_vm8 = vweird.f32 %v1281_v39 }
 0x117   : > { %v300_v42 = vsub.f32 1.0, %v299_v38  ;;  %985 = vrcp.f32 %v1283_v40  ;;  %v324_v29 = vand.u32 2147483648, %v1283_v40  ;;  %vm318_vm10 = vweird.f32 %v1283_v40 }
 0x118   : > { %v331_v43 = vmul.f32 %v978_v32, %v330_v41  ;;  %v322_v38 = vand.u32 2147483647, %v1283_v40  ;;  %vm378_vm11 = vweird.f32 %v1278_v37  ;;  %v382_v50 = vand.u32 2147483647, %v1278_v37 }
 0x119   : > { %v301_v47 = vmul.f32 %v980_v33, %v300_v42  ;;  %v355_v42 = vor.u32 1.1754944e-38, %v354_v20 }
 0x11a   : > { %v332_v51 = vadd.f32 %v978_v32, %v331_v43  ;;  %vm323_vm0 = vcmp.eq.f32.partialorder %v322_v38, 8.507059e+37 }
 0x11b   : > { %v1287_v52 = vpop.eup %981  ;;  %v302_v57 = vadd.f32 %v980_v33, %v301_v47 }
 0x11c   : > { %v1293_v61 = vpop.eup %983  ;;  %v336_v1 = vsel %vm1289_vm4, %v978_v32, %v332_v51  ;;  %v374_v16 = vmul.f32 %v1287_v52, %v1278_v37  ;;  %vm379_vm5 = vweird.f32 %v1287_v52 }
 0x11d   : > { %v986_v2 = vpop.eup %985  ;;  %v344_v6 = vmul.f32 %v1293_v61, %v1281_v39  ;;  %v1303_v8 = vpop.xlane.xlu2 %293  ;;  %v306_v12 = vsel %vm1297_vm6, %v980_v33, %v302_v57  ;;  %v341_v15 = vsel %vm338_vm7, %v340_v63, %v336_v1  ;;  %vm349_vm13 = vweird.f32 %v1293_v61 }
 0x11e   : > { %v1305_v10 = vpop.xlane.xlu0 %287  ;;  %v314_v11 = vmul.f32 %v986_v2, %v1283_v40  ;;  %987 = vrcp.f32 %v1303_v8  ;;  %v311_v31 = vsel %vm308_vm9, %v310_v4, %v306_v12  ;;  %v342_v32 = vmul.f32 %v1204_v34, %v341_v15  ;;  %vm1348_vm1 = vmor %vm348_vm8, %vm349_vm13 }
 0x11f   : > { %v345_v18 = vsub.f32 1.0, %v344_v6  ;;  %989 = vrcp.f32 %v1305_v10  ;;  %v312_v35 = vmul.f32 %v1206_v36, %v311_v31  ;;  %v375_v41 = vsub.f32 1.0, %v374_v16 }
 0x120   : > { %v315_v22 = vsub.f32 1.0, %v314_v11  ;;  %vm319_vm12 = vweird.f32 %v986_v2  ;;  %v1324_v43 = vmul.f32 -1.0, %v342_v32  ;;  %v352_v34 = vand.u32 2147483647, %v1281_v39 }
 0x121   : > { %v346_v23 = vmul.f32 %v1293_v61, %v345_v18  ;;  %v1326_v47 = vmul.f32 -1.0, %v312_v35  ;;  %v325_v36 = vor.u32 1.1754944e-38, %v324_v29  ;;  %vm320_vm14 = vmor %vm318_vm10, %vm319_vm12  ;;  %vm393_vm15 = vweird.f32 %v1303_v8 }
 0x122   : > { %v316_v33 = vmul.f32 %v986_v2, %v315_v22  ;;  %443 = vperm.xlu0 %952, %v1324_v43   ;;  %v376_v1 = vmul.f32 %v1287_v52, %v375_v41  ;;  %v399_v4 = vand.u32 2147483648, %v1303_v8  ;;  %v369_v12 = vand.u32 2147483648, %v1305_v10  ;;  %vm1379_vm10 = vmor %vm378_vm11, %vm379_vm5 }
 0x123   : > { %v347_v63 = vadd.f32 %v1293_v61, %v346_v23  ;;  %433 = vperm.xlu1 %950, %v1326_v47   ;;  %v397_v16 = vand.u32 2147483647, %v1303_v8  ;;  %vm353_vm4 = vcmp.eq.f32.partialorder %v352_v34, 8.507059e+37  ;;  %v367_v39 = vand.u32 2147483647, %v1305_v10 }
 0x124   : > { %v988_v45 = vpop.eup %987  ;;  %v317_v48 = vadd.f32 %v986_v2, %v316_v33  ;;  %vm363_vm6 = vweird.f32 %v1305_v10  ;;  %v400_v32 = vor.u32 1.1754944e-38, %v399_v4  ;;  %vm383_vm11 = vcmp.eq.f32.partialorder %v382_v50, 8.507059e+37 }
 0x125   : > { %v990_v51 = vpop.eup %989  ;;  %v389_v56 = vmul.f32 %v988_v45, %v1303_v8  ;;  %vm394_vm2 = vweird.f32 %v988_v45  ;;  %vm398_vm9 = vcmp.eq.f32.partialorder %v397_v16, 8.507059e+37  ;;  %vm368_vm12 = vcmp.eq.f32.partialorder %v367_v39, 8.507059e+37  ;;  %v426_v39 = vld [vmem:[%s1575_s1] sm:$0x1] }
 0x126   : > { %v1333_v57 = vpop.xlane.xlu0 %296  ;;  %v359_v0 = vmul.f32 %v990_v51, %v1305_v10  ;;  %v321_v6 = vsel %vm320_vm14, %v986_v2, %v317_v48  ;;  %v351_v2 = vsel %vm1348_vm1, %v1293_v61, %v347_v63  ;;  %vm364_vm3 = vweird.f32 %v990_v51  ;;  %vm1363_vm7 = vmor %vm393_vm15, %vm394_vm2 }
 0x127   : > { %991 = vrcp.f32 %v1333_v57  ;;  %v390_v3 = vsub.f32 1.0, %v389_v56  ;;  %v326_v15 = vsel %vm323_vm0, %v325_v36, %v321_v6  ;;  %v370_v61 = vor.u32 1.1754944e-38, %v369_v12  ;;  %vm1367_vm8 = vmor %vm363_vm6, %vm364_vm3 }
 0x128   : > { %v360_v11 = vsub.f32 1.0, %v359_v0  ;;  %v327_v20 = vmul.f32 %v1220_v49, %v326_v15  ;;  %v356_v33 = vsel %vm353_vm4, %v355_v42, %v351_v2  ;;  %v1092_v10 = vmov 1  }
 0x129   : > { %v391_v18 = vmul.f32 %v988_v45, %v390_v3  ;;  %v377_v48 = vadd.f32 %v1287_v52, %v376_v1  ;;  %v385_v1 = vor.u32 1.1754944e-38, %v384_v21  ;;  %vm408_vm13 = vweird.f32 %v1333_v57 }
 0x12a   : > { %v361_v22 = vmul.f32 %v990_v51, %v360_v11  ;;  %v419_v23 = vmul.f32 -1.0, %v327_v20  ;;  %954 = vset.pattern.permute.xlu0 %v1092_v10  ;;  %v412_v11 = vand.u32 2147483647, %v1333_v57  ;;  %vm427_vm1 = vcmp.eq.s32.totalorder %v426_v39, 0 }
 0x12b   : > { %v392_v29 = vadd.f32 %v988_v45, %v391_v18  ;;  %v381_v6 = vsel %vm1379_vm10, %v1287_v52, %v377_v48  ;;  %vm479_vm2 = vcmp.eq.s32.totalorder %v426_v39, 1 }
 0x12c   : > { %v362_v35 = vadd.f32 %v990_v51, %v361_v22  ;;  %438 = vperm.xlu2 %951, %v419_v23   ;;  %488 = vperm.xlu0 %954, %v419_v23   ;;  %v386_v21 = vsel %vm383_vm11, %v385_v1, %v381_v6  ;;  %vm413_vm0 = vcmp.eq.f32.partialorder %v412_v11, 8.507059e+37  ;;  %vm648_vm11 = vcmp.eq.f32.partialorder %v1262_v19, 0.0 }
 0x12d   : > { %v992_v31 = vpop.eup %991  ;;  %v396_v8 = vsel %vm1363_vm7, %v988_v45, %v392_v29  ;;  %v357_v45 = vmul.f32 %v1216_v46, %v356_v33  ;;  %v387_v52 = vmul.f32 %v1213_v44, %v386_v21  ;;  %v608_v44 = vsub.f32 %v1276_v30, %v1250_v62 }
 0x12e   : > { %v404_v41 = vmul.f32 %v992_v31, %v1333_v57  ;;  %v366_v34 = vsel %vm1367_vm8, %v990_v51, %v362_v35  ;;  %v401_v36 = vsel %vm398_vm9, %v400_v32, %v396_v8  ;;  %vm409_vm14 = vweird.f32 %v992_v31 }
 0x12f   : > { %v371_v63 = vsel %vm368_vm12, %v370_v61, %v366_v34  ;;  %v402_v0 = vmul.f32 %v1230_v55, %v401_v36  ;;  %v421_v46 = vmul.f32 -1.0, %v357_v45  ;;  %v414_v55 = vand.u32 2147483648, %v1333_v57  ;;  %vm410_vm15 = vmor %vm408_vm13, %vm409_vm14 }
 0x130   : > { %v405_v56 = vsub.f32 1.0, %v404_v41  ;;  %v372_v3 = vmul.f32 %v1228_v54, %v371_v63  ;;  %v423_v12 = vmul.f32 -1.0, %v387_v52  ;;  %v611_v57 = vsub.f32 %v1273_v28, %v1250_v62 }
 0x131   : > { %v424_v40 = vmul.f32 -1.0, %v402_v0  ;;  %v415_v37 = vor.u32 1.1754944e-38, %v414_v55  ;;  %v480_v8 = vsel %vm479_vm2, 1, %v1091_v27  ;;  %vm670_vm7 = vcmp.eq.f32.partialorder %v1254_v5, inf }
 0x132   : > { %v406_v4 = vmul.f32 %v992_v31, %v405_v56  ;;  %v422_v51 = vmul.f32 -1.0, %v372_v3  ;;  %v481_v56 = vperm.slane %v480_v8, 0  ;;  %vm672_vm8 = vcmp.eq.f32.partialorder %v1254_v5, 0.0 }
 0x133   : > { %vm646_vm12 = vcmp.eq.f32.partialorder %v1262_v19, inf  ;;  %vm682_vm13 = vcmp.eq.f32.partialorder %v1265_v24, inf  ;;  %vm684_vm14 = vcmp.eq.f32.partialorder %v1265_v24, 0.0 }
 0x134   : > { %453 = vperm.xlu1 %950, %v422_v51   ;;  %448 = vperm.xlu2 %951, %v421_v46   ;;  %v407_v54 = vadd.f32 %v992_v31, %v406_v4  ;;  %vm1441_vm6 = vcmp.eq.s32.totalorder %v481_v56, 1 }
 0x135   : > { %508 = vperm.xlu0 %954, %v424_v40  }
 0x136   : > { %v411_v50 = vsel %vm410_vm15, %v992_v31, %v407_v54  ;;  %v428_v31 = vsel %vm427_vm1, 1, %v1091_v27 }
 0x137   : > { %v416_v15 = vsel %vm413_vm0, %v415_v37, %v411_v50  ;;  %v429_v33 = vperm.slane %v428_v31, 0  ;;  %v572_v31 = vsub.f32 %v1269_v26, %v1243_v60 }
 0x138   : > { %v417_v16 = vmul.f32 %v1238_v59, %v416_v15 }
 0x139   : > { %vm1429_vm3 = vcmp.eq.s32.totalorder %v429_v33, 1  ;;  %v621_v26 = vmul.f32 %v572_v31, %v572_v31 }
 0x13a   : > { %v425_v18 = vmul.f32 -1.0, %v417_v16 }
 0x13c   : > { %463 = vperm.xlu1 %950, %v424_v40   ;;  %458 = vperm.xlu2 %951, %v423_v12  }
 0x13d   : > { %957 = vset.pattern.permute.xlu0 %v1090_v17 }
 0x13e   : > { %599 = vperm.xlu0 %957, %v1188_v14   ;;  %v567_v14 = vsub.f32 %v1267_v25, %v1243_v60 }
 0x140   : > { %v616_v59 = vmul.f32 %v567_v14, %v567_v14 }
 0x144   : > { %953 = vset.pattern.permute.xlu1 %v1092_v10  ;;  %468 = vperm.xlu2 %951, %v425_v18  }
 0x145   : > { %484 = vperm.xlu1 %953, %v1326_v47   ;;  %v624_v47 = vmul.f32 %v608_v44, %v608_v44 }
 0x14c   : > { %955 = vset.pattern.permute.xlu2 %v1092_v10 }
 0x14d   : > { %496 = vperm.xlu1 %953, %v421_v46   ;;  %492 = vperm.xlu2 %955, %v1324_v43   ;;  %v632_v43 = vadd.f32 %v624_v47, %v616_v59  ;;  %v673_v47 = vand.u32 2147483648, %v1254_v5 }
 0x14f   : > { %993 = vrsqrt.f32 %v632_v43  ;;  %vm658_vm4 = vcmp.eq.f32.partialorder %v632_v43, inf  ;;  %vm660_vm5 = vcmp.eq.f32.partialorder %v632_v43, 0.0  ;;  %v661_v1 = vand.u32 2147483648, %v632_v43 }
 0x150   : > { %995 = vrsqrt.f32 %v1254_v5 }
 0x155   : > { %504 = vperm.xlu1 %953, %v423_v12   ;;  %500 = vperm.xlu2 %955, %v422_v51   ;;  %v994_v20 = vpop.eup %993 }
 0x156   : > { %v996_v30 = vpop.eup %995 }
 0x157   : > { %v664_v28 = vmul.f32 %v996_v30, %v1254_v5 }
 0x159   : > { %v665_v49 = vmul.f32 %v996_v30, %v664_v28 }
 0x15b   : > { %v666_v35 = vmul.f32 0.5, %v665_v49 }
 0x15d   : > { %956 = vset.pattern.permute.xlu1 %v1090_v17  ;;  %512 = vperm.xlu2 %955, %v425_v18   ;;  %v667_v36 = vsub.f32 1.5, %v666_v35 }
 0x15e   : > { %595 = vperm.xlu1 %956, %v1180_v7   ;;  %v570_v7 = vsub.f32 %v1226_v53, %v1243_v60 }
 0x15f   : > { %v668_v27 = vmul.f32 %v996_v30, %v667_v36 }
 0x160   : > { %v619_v2 = vmul.f32 %v570_v7, %v570_v7 }
 0x161   : > { %v669_v50 = vmul.f32 %v668_v27, %v1254_v5 }
 0x163   : > { %v671_v14 = vsel %vm670_vm7, %v1254_v5, %v669_v50 }
 0x164   : > { %v674_v7 = vsel %vm672_vm8, %v673_v47, %v671_v14 }
 0x165   : > { %958 = vset.pattern.permute.xlu2 %v1090_v17  ;;  %v652_v17 = vmul.f32 %v994_v20, %v632_v43 }
 0x166   : > { %603 = vperm.xlu2 %958, %v1186_v13   ;;  %v627_v13 = vmul.f32 %v611_v57, %v611_v57 }
 0x167   : > { %v653_v23 = vmul.f32 %v994_v20, %v652_v17 }
 0x168   : > { %v1417_v22 = vadd.f32 %v627_v13, %v619_v2 }
 0x169   : > { %v654_v53 = vmul.f32 0.5, %v653_v23 }
 0x16a   : > { %997 = vrsqrt.f32 %v1417_v22  ;;  %vm694_vm9 = vcmp.eq.f32.partialorder %v1417_v22, inf  ;;  %vm696_vm10 = vcmp.eq.f32.partialorder %v1417_v22, 0.0 }
 0x16b   : > { %v655_v32 = vsub.f32 1.5, %v654_v53  ;;  %999 = vrsqrt.f32 %v1262_v19  ;;  %v697_v53 = vand.u32 2147483648, %v1417_v22 }
 0x16c   : > { %1001 = vrsqrt.f32 %v1265_v24 }
 0x16d   : > { %v656_v38 = vmul.f32 %v994_v20, %v655_v32 }
 0x16f   : > { %v657_v45 = vmul.f32 %v656_v38, %v632_v43 }
 0x170   : > { %v998_v61 = vpop.eup %997 }
 0x171   : > { %v688_v41 = vmul.f32 %v998_v61, %v1417_v22  ;;  %v1000_v0 = vpop.eup %999  ;;  %v659_v6 = vsel %vm658_vm4, %v632_v43, %v657_v45 }
 0x172   : > { %v640_v40 = vmul.f32 %v1000_v0, %v1262_v19  ;;  %v662_v54 = vsel %vm660_vm5, %v661_v1, %v659_v6  ;;  %v1002_v52 = vpop.eup %1001 }
 0x173   : > { %v689_v63 = vmul.f32 %v998_v61, %v688_v41  ;;  %v676_v16 = vmul.f32 %v1002_v52, %v1265_v24 }
 0x174   : > { %v641_v15 = vmul.f32 %v1000_v0, %v640_v40 }
 0x175   : > { %v690_v51 = vmul.f32 0.5, %v689_v63  ;;  %v677_v17 = vmul.f32 %v1002_v52, %v676_v16 }
 0x176   : > { %v642_v59 = vmul.f32 0.5, %v641_v15 }
 0x177   : > { %v691_v12 = vsub.f32 1.5, %v690_v51  ;;  %v678_v39 = vmul.f32 0.5, %v677_v17 }
 0x178   : > { %v643_v30 = vsub.f32 1.5, %v642_v59 }
 0x179   : > { %v692_v44 = vmul.f32 %v998_v61, %v691_v12  ;;  %v679_v38 = vsub.f32 1.5, %v678_v39 }
 0x17a   : > { %v644_v28 = vmul.f32 %v1000_v0, %v643_v30 }
 0x17b   : > { %v680_v56 = vmul.f32 %v1002_v52, %v679_v38 }
 0x17d   : > { %v681_v40 = vmul.f32 %v680_v56, %v1265_v24 }
 0x186   : > { %v439_v25 = vpop.permute.xlu2 %438 }
 0x187   : > { %v472_v55 = vsel %vm1429_vm3, %v439_v25, 0.0  ;;  %v693_v25 = vmul.f32 %v692_v44, %v1417_v22 }
 0x189   : > { %v695_v5 = vsel %vm694_vm9, %v1417_v22, %v693_v25  ;;  %v649_v22 = vand.u32 2147483648, %v1262_v19 }
 0x18a   : > { %v698_v61 = vsel %vm696_vm10, %v697_v53, %v695_v5 }
 0x18e   : > { %v1424_v29 = vpop.permute.xlu2 %448 }
 0x194   : > { %v444_v42 = vpop.permute.xlu0 %443 }
 0x195   : > { %v1445_v4 = vpop.permute.xlu1 %433  ;;  %v473_v43 = vsel %vm1429_vm3, %v444_v42, 0.0  ;;  %v645_v42 = vmul.f32 %v644_v28, %v1262_v19 }
 0x196   : > { %v1434_v48 = vpop.permute.xlu2 %458  ;;  %v471_v1 = vsel %vm1429_vm3, %v1445_v4, 0.0  ;;  %v474_v4 = vsel %vm1429_vm3, %v1424_v29, 0.0 }
 0x197   : > { %v476_v34 = vsel %vm1429_vm3, %v1434_v48, 0.0  ;;  %v647_v63 = vsel %vm646_vm12, %v1262_v19, %v645_v42  ;;  %v683_v19 = vsel %vm682_vm13, %v1265_v24, %v681_v40 }
 0x198   : > { %v650_v6 = vsel %vm648_vm11, %v649_v22, %v647_v63 }
 0x19e   : > { %v1450_v46 = vpop.permute.xlu2 %468  ;;  %v489_v21 = vpop.permute.xlu0 %488 }
 0x19f   : > { %v516_v11 = vsel %vm1441_vm6, %v489_v21, %v472_v55 }
 0x1a0   : > { %v736_v37 = vadd.f32 %v662_v54, %v516_v11  ;;  %v685_v54 = vand.u32 2147483648, %v1265_v24 }
 0x1a2   : > { %744 = vst [vmem:[%s1457_s18 + $0x8] sm:$0xff] %v736_v37  ;;  %v573_v37 = vsub.f32 %v1236_v58, %v1243_v60  ;;  %v686_v50 = vsel %vm684_vm14, %v685_v54, %v683_v19 }
 0x1a4   : > { %v622_v59 = vmul.f32 %v573_v37, %v573_v37 }
 0x1a6   : > { %v454_v18 = vpop.permute.xlu1 %453 }
 0x1a7   : > { %v493_v57 = vpop.permute.xlu2 %492  ;;  %v1467_v20 = vpop.permute.xlu0 %508  ;;  %v475_v49 = vsel %vm1429_vm3, %v454_v18, 0.0 }
 0x1a8   : > { %v517_v13 = vsel %vm1441_vm6, %v493_v57, %v473_v43 }
 0x1a9   : > { %v737_v2 = vadd.f32 %v674_v7, %v517_v13 }
 0x1ab   : > { %745 = vst [vmem:[%s1457_s18 + $0x10] sm:$0xff] %v737_v2 }
 0x1ae   : > { %v1474_v23 = vpop.permute.xlu1 %463 }
 0x1af   : > { %v501_v32 = vpop.permute.xlu2 %500  ;;  %v477_v58 = vsel %vm1429_vm3, %v1474_v23, 0.0 }
 0x1b0   : > { %v519_v33 = vsel %vm1441_vm6, %v501_v32, %v475_v49  ;;  %v600_v35 = vpop.permute.xlu0 %599  ;;  %v521_v2 = vsel %vm1441_vm6, %v1467_v20, %v477_v58 }
 0x1b1   : > { %v739_v41 = vadd.f32 %v698_v61, %v519_v33  ;;  %v613_v8 = vsub.f32 %v600_v35, %v1250_v62  ;;  %v478_v35 = vsel %vm1429_vm3, %v1450_v46, 0.0 }
 0x1b3   : > { %747 = vst [vmem:[%s1457_s18 + $0x20] sm:$0xff] %v739_v41  ;;  %v629_v36 = vmul.f32 %v613_v8, %v613_v8 }
 0x1b5   : > { %v637_v45 = vadd.f32 %v629_v36, %v621_v26 }
 0x1b7   : > { %v485_v0 = vpop.permute.xlu1 %484  ;;  %1003 = vrsqrt.f32 %v637_v45  ;;  %v513_v27 = vpop.permute.xlu2 %512  ;;  %vm718_vm15 = vcmp.eq.f32.partialorder %v637_v45, inf  ;;  %v721_v13 = vand.u32 2147483648, %v637_v45  ;;  %vm720_vm0 = vcmp.eq.f32.partialorder %v637_v45, 0.0 }
 0x1b8   : > { %v515_v51 = vsel %vm1441_vm6, %v485_v0, %v471_v1 }
 0x1b9   : > { %v735_v55 = vadd.f32 %v650_v6, %v515_v51 }
 0x1bb   : > { %743 = vst [vmem:[%s1457_s18] sm:$0xff] %v735_v55 }
 0x1bd   : > { %v1004_v21 = vpop.eup %1003 }
 0x1be   : > { %v712_v11 = vmul.f32 %v1004_v21, %v637_v45 }
 0x1bf   : > { %v497_v52 = vpop.permute.xlu1 %496 }
 0x1c0   : > { %v518_v12 = vsel %vm1441_vm6, %v497_v52, %v474_v4  ;;  %v713_v15 = vmul.f32 %v1004_v21, %v712_v11  ;;  %v604_v18 = vpop.permute.xlu2 %603 }
 0x1c1   : > { %v738_v16 = vadd.f32 %v686_v50, %v518_v12  ;;  %v614_v14 = vsub.f32 %v604_v18, %v1250_v62 }
 0x1c2   : > { %v714_v44 = vmul.f32 0.5, %v713_v15 }
 0x1c3   : > { %746 = vst [vmem:[%s1457_s18 + $0x18] sm:$0xff] %v738_v16  ;;  %v630_v29 = vmul.f32 %v614_v14, %v614_v14 }
 0x1c4   : > { %v715_v47 = vsub.f32 1.5, %v714_v44 }
 0x1c5   : > { %v638_v24 = vadd.f32 %v630_v29, %v622_v59 }
 0x1c6   : > { %v716_v43 = vmul.f32 %v1004_v21, %v715_v47 }
 0x1c7   : > { %v505_v57 = vpop.permute.xlu1 %504  ;;  %1005 = vrsqrt.f32 %v638_v24  ;;  %vm730_vm1 = vcmp.eq.f32.partialorder %v638_v24, inf  ;;  %v733_v33 = vand.u32 2147483648, %v638_v24  ;;  %vm732_vm2 = vcmp.eq.f32.partialorder %v638_v24, 0.0 }
 0x1c8   : > { %v717_v60 = vmul.f32 %v716_v43, %v637_v45  ;;  %v520_v7 = vsel %vm1441_vm6, %v505_v57, %v476_v34  ;;  %v620_v34 = vmul.f32 %v1257_v9, %v1257_v9  ;;  %v522_v9 = vsel %vm1441_vm6, %v513_v27, %v478_v35 }
 0x1ca   : > { %v719_v17 = vsel %vm718_vm15, %v637_v45, %v717_v60 }
 0x1cb   : > { %v722_v25 = vsel %vm720_vm0, %v721_v13, %v719_v17 }
 0x1cc   : > { %v741_v30 = vadd.f32 %v722_v25, %v521_v2 }
 0x1cd   : > { %v1006_v39 = vpop.eup %1005 }
 0x1ce   : > { %749 = vst [vmem:[%s1457_s18 + $0x30] sm:$0xff] %v741_v30  ;;  %v724_v23 = vmul.f32 %v1006_v39, %v638_v24 }
 0x1d0   : > { %v596_v5 = vpop.permute.xlu1 %595  ;;  %v725_v28 = vmul.f32 %v1006_v39, %v724_v23 }
 0x1d1   : > { %v612_v48 = vsub.f32 %v596_v5, %v1250_v62 }
 0x1d2   : > { %v726_v53 = vmul.f32 0.5, %v725_v28 }
 0x1d3   : > { %v628_v31 = vmul.f32 %v612_v48, %v612_v48 }
 0x1d4   : > { %v727_v49 = vsub.f32 1.5, %v726_v53 }
 0x1d5   : > { %v636_v32 = vadd.f32 %v628_v31, %v620_v34 }
 0x1d6   : > { %v728_v61 = vmul.f32 %v1006_v39, %v727_v49 }
 0x1d7   : > { %1007 = vrsqrt.f32 %v636_v32  ;;  %vm706_vm3 = vcmp.eq.f32.partialorder %v636_v32, inf  ;;  %v709_v3 = vand.u32 2147483648, %v636_v32  ;;  %vm708_vm4 = vcmp.eq.f32.partialorder %v636_v32, 0.0 }
 0x1d8   : > { %v729_v20 = vmul.f32 %v728_v61, %v638_v24 }
 0x1da   : > { %v731_v62 = vsel %vm730_vm1, %v638_v24, %v729_v20 }
 0x1db   : > { %v734_v38 = vsel %vm732_vm2, %v733_v33, %v731_v62 }
 0x1dc   : > { %v742_v8 = vadd.f32 %v734_v38, %v522_v9 }
 0x1dd   : > { %v1008_v41 = vpop.eup %1007 }
 0x1de   : > { %v700_v42 = vmul.f32 %v1008_v41, %v636_v32  ;;  %750 = vst [vmem:[%s1457_s18 + $0x38] sm:$0xff] %v742_v8 }
 0x1e0   : > { %v701_v26 = vmul.f32 %v1008_v41, %v700_v42 }
 0x1e2   : > { %v702_v36 = vmul.f32 0.5, %v701_v26 }
 0x1e4   : > { %v703_v22 = vsub.f32 1.5, %v702_v36 }
 0x1e6   : > { %v704_v56 = vmul.f32 %v1008_v41, %v703_v22 }
 0x1e8   : > { %v705_v10 = vmul.f32 %v704_v56, %v636_v32 }
 0x1ea   : > { %v707_v46 = vsel %vm706_vm3, %v636_v32, %v705_v10 }
 0x1eb   : > { %v710_v45 = vsel %vm708_vm4, %v709_v3, %v707_v46 }
 0x1ec   : > { %v740_v63 = vadd.f32 %v710_v45, %v520_v7 }
 0x1ee   : > { %748 = vst [vmem:[%s1457_s18 + $0x28] sm:$0xff] %v740_v63 }
 0x1ef   : > { %1036 = shalt.err (!%p1033_p5)
}
 0x1f0   : > { %s1093_s9 = smov 128   ;;  %s1094_s10 = smov 8  }
 0x1f1   : > { %883 = dma.vmem_to_hbm [thread:$0]  (%p1155_p4), %s766_s27, 1024, %s768_s28, %s752_s15, %s1093_s9, %s1093_s9, %s1094_s10  }
 0x1f2 PF: > { %p889_p6 = scmp.ge.s32.totalorder %s1087_s17, 2  ;;  %s782_s11 = sand.u32 1, %s1067_s12  }
 0x1f3   : > { %s783_s18 = scalar_lea.sflag [#allocation3], %s782_s11 }
 0x1f4   : > { %p886_p7 = pnand %p889_p6, %p1162_p8 }
 0x1f6   : > { %p887_p9 = pneg %p886_p7 }
 0x1f8   : > { %1062 = dma.done.wait (%p887_p9), %s783_s18, 1024  }
 0x1f9   : > { %1064 = vsyncadd (%p887_p9), %s783_s18, 4294966272  ;;  %s16_s17 = sadd.s32 1, %s1087_s17   ;;  %s1596_s12 = smov %s1071_s13 }
 0x1fa   : > { %p13_p10 = scmp.ge.s32.totalorder %s16_s17, 6   ;;  %s1597_s13 = smov %s1075_s14 }
 0x1fb   : > { %s1598_s14 = smov %s1168_s25  ;;  %s1599_s15 = smov %s1083_s16 }
 0x1fc   : > { %s1600_s16 = smov %s1602_s20  ;;  %15 = sbr.rel (!%p13_p10) target bundleno = 4 (0x4), region = 73 }
 0x201   :  { %789 = vsyncpa [#allocation3], 1 }
 0x202   :  { %791 = vsyncpa [#allocation3 + $0x1], 1 }

</bundles_post_ra>
